<compile_context>
chip_gen: v5e
topology: v5e:2x2
jax: 0.10.0
libtpu: 0.0.40
codegen_flags: <defaults>
</compile_context>

<pallas_src>
import jax
import jax.numpy as jnp
from jax.experimental import pallas as pl
from jax.experimental.pallas import tpu as pltpu

COLL_COEF = 0.5      # KINET_DSMC.coll_coef (training mode)
DT = 1.0             # KINET_DSMC.dt
BN_EPS = 1e-5


def _round_up(x, m):
    return ((x + m - 1) // m) * m


# --------------------------------------------------------------------------------------
# Tiled Pallas matmul (conv1 / conv2 / optional 1x1 shortcut conv via im2col)
# --------------------------------------------------------------------------------------
def _matmul_kernel(a_ref, b_ref, o_ref, acc_ref):
    @pl.when(pl.program_id(2) == 0)
    def _():
        acc_ref[...] = jnp.zeros_like(acc_ref)

    acc_ref[...] += jnp.dot(a_ref[...], b_ref[...], preferred_element_type=jnp.float32)
    o_ref[...] = acc_ref[...].astype(o_ref.dtype)


def pallas_matmul(a, b, tm=256, tn=256, tk=512):
    """(M, K) @ (K, N) -> (M, N) f32 via a tiled, pipelined Pallas MXU kernel.

    Dims are zero-padded up to tile multiples; N in particular is padded to a multiple of
    128 so the output stores are lane-dense.  256-wide tiles match the v6e/v7x MXU
    macro-tile; on v5e 128-wide tiles would be marginally better (tiles are clipped to the
    problem size anyway, so small conv shapes stay small).
    """
    M, K = a.shape
    K2, N = b.shape
    assert K == K2
    a = a.astype(jnp.float32)
    b = b.astype(jnp.float32)

    tm = min(tm, _round_up(M, 8))
    tn = min(tn, _round_up(N, 128))
    tk = min(tk, _round_up(K, 128))
    Mp, Kp, Np = _round_up(M, tm), _round_up(K, tk), _round_up(N, tn)
    if (Mp, Kp) != (M, K):
        a = jnp.pad(a, ((0, Mp - M), (0, Kp - K)))
    if (Kp, Np) != (K, N):
        b = jnp.pad(b, ((0, Kp - K), (0, Np - N)))

    out = pl.pallas_call(
        _matmul_kernel,
        out_shape=jax.ShapeDtypeStruct((Mp, Np), jnp.float32),
        grid_spec=pltpu.PrefetchScalarGridSpec(
            num_scalar_prefetch=0,
            grid=(Mp // tm, Np // tn, Kp // tk),
            in_specs=[pl.BlockSpec((tm, tk), lambda i, j, k: (i, k)),
                      pl.BlockSpec((tk, tn), lambda i, j, k: (k, j))],
            out_specs=pl.BlockSpec((tm, tn), lambda i, j, k: (i, j)),
            scratch_shapes=[pltpu.VMEM((tm, tn), jnp.float32)]),
        compiler_params=pltpu.CompilerParams(
            dimension_semantics=("parallel", "parallel", "arbitrary")),
    )(a, b)
    return out[:M, :N]


def _im2col(x, ksize, stride, pad):
    # TODO(synk): fuse im2col into the matmul kernel (k*k as an extra 'arbitrary' reduction
    # grid axis with shifted index_maps, or NHWC-native conv) to avoid the k^2 HBM blow-up;
    # kept as plain-JAX glue here.
    B, C, H, W = x.shape
    xp = jnp.pad(x, ((0, 0), (0, 0), (pad, pad), (pad, pad)))
    Ho = (H + 2 * pad - ksize) // stride + 1
    Wo = (W + 2 * pad - ksize) // stride + 1
    cols = []
    for di in range(ksize):
        for dj in range(ksize):
            cols.append(xp[:, :, di:di + stride * Ho:stride, dj:dj + stride * Wo:stride])
    cols = jnp.stack(cols, axis=2)                       # (B, C, k*k, Ho, Wo)  channel-major
    cols = cols.reshape(B, C * ksize * ksize, Ho * Wo)
    cols = cols.transpose(0, 2, 1).reshape(B * Ho * Wo, C * ksize * ksize)
    return cols, Ho, Wo


def conv2d(x, w, stride=1, pad=1, use_pallas=True):
    """x: (B, Cin, H, W) NCHW; w: (Cout, Cin, k, k) (PyTorch layout). No bias."""
    B = x.shape[0]
    Cout, Cin, k, _ = w.shape
    cols, Ho, Wo = _im2col(x, k, stride, pad)
    w2 = w.reshape(Cout, Cin * k * k).T
    if use_pallas:
        out = pallas_matmul(cols, w2)
    else:
        out = jnp.dot(cols, w2, preferred_element_type=jnp.float32)
    return out.reshape(B, Ho, Wo, Cout).transpose(0, 3, 1, 2)


def batchnorm_train(x, gamma, beta, eps=BN_EPS):
    # BatchNorm2d in training mode: per-channel batch mean / biased variance.
    # TODO(synk): fuse the normalize/affine/ReLU pass into the matmul epilogue (needs a
    # stats-first two-pass schedule); kept as plain-JAX glue here.
    mean = jnp.mean(x, axis=(0, 2, 3), keepdims=True)
    var = jnp.mean((x - mean) ** 2, axis=(0, 2, 3), keepdims=True)
    xn = (x - mean) / jnp.sqrt(var + eps)
    return gamma.reshape(1, -1, 1, 1) * xn + beta.reshape(1, -1, 1, 1)


# --------------------------------------------------------------------------------------
# KINET_DSMC Pallas kernel
# --------------------------------------------------------------------------------------
def _dsmc_kernel(x_ref, v_ref, a_ref, A_ref, xo_ref, vo_ref):
    # Block shapes: x/v/a/out: (bb, C, N), A: (bb, C, N, N) (antisymmetric in (i, j)).
    x = x_ref[...]
    v = v_ref[...] + a_ref[...] * DT                    # v = v + a*dt
    A = A_ref[...]

    # Pairwise norms via the MXU Gram trick; never materializes (C, N, N) differences.
    gx = jnp.einsum('bci,bcj->bij', x, x, preferred_element_type=jnp.float32)
    gv = jnp.einsum('bci,bcj->bij', v, v, preferred_element_type=jnp.float32)
    sx = jnp.sum(x * x, axis=1)                         # (bb, N) == diag(gx)
    sv = jnp.sum(v * v, axis=1)
    x_r = jnp.sqrt(jnp.maximum(sx[:, :, None] + sx[:, None, :] - 2.0 * gx, 0.0))
    v_r = jnp.sqrt(jnp.maximum(sv[:, :, None] + sv[:, None, :] - 2.0 * gv, 0.0))

    u_x = jnp.exp(-x_r)
    v_r_max = jnp.max(jnp.max(v_r, axis=-1, keepdims=True), axis=-2, keepdims=True)  # (bb,1,1)
    # Divide-free threshold: v_r/v_r_max*u_x > 1-coll  <=>  v_r*u_x > (1-coll)*v_r_max
    # (no divide, no NaN when v_r_max == 0; matches torch's "NaN > t is False" behavior).
    cm = v_r * u_x > (1.0 - COLL_COEF) * v_r_max        # (bb, N, N) bool
    cm_f = cm.astype(jnp.float32)                       # needed as MXU operand
    vr_cm = jnp.where(cm, v_r, 0.0)                     # fold mask into v_r once

    # sum_i cm[i,j]*delta_v[c,i,j]
    #   = -0.5*(V@cm)[c,j] + 0.5*v[c,j]*colsum(cm)[j] + sum_i A[c,i,j]*(v_r*cm)[i,j]
    v_cm = jnp.einsum('bci,bij->bcj', v, cm_f, preferred_element_type=jnp.float32)
    cs = jnp.sum(cm_f, axis=1)                          # (bb, N), sum over i
    term_a = jnp.sum(A * vr_cm[:, None, :, :], axis=2)  # (bb, C, N), sum over i

    v_new = v - 0.5 * v_cm + 0.5 * v * cs[:, None, :] + term_a
    x_new = x + v_new * DT

    xo_ref[...] = x_new
    vo_ref[...] = v_new


def _dsmc_pallas(x3, v3, a3, A):
    B, C, N = x3.shape
    # Process a block of `bb` batch elements per grid step: amortizes per-step pipeline
    # overhead and fills sublanes at small n.  bb is bounded so the double-buffered
    # (bb, C, N, N) A tile stays well inside every generation's scoped VMEM (v7x: 64 MiB
    # physical).  At larger n, tiling A over one particle dim would be the next step.
    bytes_per_b = (C * N * N + 5 * C * N) * 4
    bb = max(1, min(B, (6 << 20) // max(bytes_per_b, 1)))
    Bp = _round_up(B, bb)
    if Bp != B:
        # Zero-padded batch rows are harmless: v_r_max == 0 -> no collisions -> zero output.
        x3 = jnp.pad(x3, ((0, Bp - B), (0, 0), (0, 0)))
        v3 = jnp.pad(v3, ((0, Bp - B), (0, 0), (0, 0)))
        a3 = jnp.pad(a3, ((0, Bp - B), (0, 0), (0, 0)))
        A = jnp.pad(A, ((0, Bp - B), (0, 0), (0, 0), (0, 0)))

    vec_spec = pl.BlockSpec((bb, C, N), lambda i: (i, 0, 0))
    mat_spec = pl.BlockSpec((bb, C, N, N), lambda i: (i, 0, 0, 0))
    xo, vo = pl.pallas_call(
        _dsmc_kernel,
        out_shape=(jax.ShapeDtypeStruct((Bp, C, N), jnp.float32),
                   jax.ShapeDtypeStruct((Bp, C, N), jnp.float32)),
        grid=(Bp // bb,),
        in_specs=[vec_spec, vec_spec, vec_spec, mat_spec],
        out_specs=(vec_spec, vec_spec),
        compiler_params=pltpu.CompilerParams(dimension_semantics=("parallel",)),
    )(x3, v3, a3, A)
    return xo[:B], vo[:B]


def _dsmc_ref(x3, v3, a3, A):
    # Pure-JAX reference (PyTorch-faithful math; the pairwise norms use the mathematically
    # identical Gram formulation so mask decisions are comparable at float precision).
    v = v3 + a3 * DT
    x = x3
    gx = jnp.einsum('bci,bcj->bij', x, x)
    gv = jnp.einsum('bci,bcj->bij', v, v)
    sx = jnp.sum(x * x, axis=1)
    sv = jnp.sum(v * v, axis=1)
    x_r = jnp.sqrt(jnp.maximum(sx[:, :, None] + sx[:, None, :] - 2.0 * gx, 0.0))
    v_r = jnp.sqrt(jnp.maximum(sv[:, :, None] + sv[:, None, :] - 2.0 * gv, 0.0))
    u_x = jnp.exp(-x_r)
    v_r_max = jnp.max(v_r, axis=(1, 2), keepdims=True)
    mask = v_r / jnp.maximum(v_r_max, 1e-30) * u_x
    cm = (mask > (1.0 - COLL_COEF)).astype(jnp.float32)
    v_cm = 0.5 * (v[:, :, :, None] + v[:, :, None, :])          # direct (B,C,N,N) form, ref only
    delta = v_cm + v_r[:, None] * A - v[:, :, :, None]
    v_new = v + jnp.sum(delta * cm[:, None], axis=2)
    x_new = x + v_new * DT
    return x_new, v_new


def kinet_dsmc_forward(x, v, a, rand_vec, use_pallas=True):
    bs, c_old, h, w = x.shape
    chnl = rand_vec.shape[1]
    n = (h * w * c_old) // chnl          # matches PyTorch: int(h*w / (chnl/chnl_old))

    x3 = x.reshape(bs, chnl, n).astype(jnp.float32)
    v3 = v.reshape(bs, chnl, n).astype(jnp.float32)
    a3 = a.reshape(bs, chnl, n).astype(jnp.float32)

    # project_to_antisymmetric: scatter rand_vec pairs into the upper triangle and
    # antisymmetrize.  TODO(synk): gather/scatter kept in plain-JAX glue; could stream
    # rand_vec (npairs) directly and antisymmetrize in-kernel to halve the A HBM traffic.
    npairs = n * (n - 1) // 2
    iu, ju = jnp.triu_indices(n, k=1)    # same row-major pair order as torch.triu_indices
    pair_idx = jnp.zeros((n, n), jnp.int32).at[iu, ju].set(jnp.arange(npairs, dtype=jnp.int32))
    upper = jnp.zeros((n, n), jnp.float32).at[iu, ju].set(1.0)
    rv = rand_vec[:bs].astype(jnp.float32)                               # (bs, chnl, npairs)
    RS = jnp.take(rv, pair_idx.reshape(-1), axis=2).reshape(bs, chnl, n, n) * upper
    A = RS - jnp.swapaxes(RS, -1, -2)     # antisymmetric; v_r_leaving = v_r[:,None] * A

    if use_pallas:
        xo, vo = _dsmc_pallas(x3, v3, a3, A)
    else:
        xo, vo = _dsmc_ref(x3, v3, a3, A)
    return xo.reshape(bs, c_old, h, w), vo.reshape(bs, c_old, h, w)


# --------------------------------------------------------------------------------------
# KINET_BasicBlock forward
# --------------------------------------------------------------------------------------
def conv_bn_path(params, x, stride=1, use_pallas=True):
    # a = bn2(conv2(relu(bn1(conv1(x)))))
    a = conv2d(x, params["conv1_w"], stride=stride, pad=1, use_pallas=use_pallas)
    a = jnp.maximum(batchnorm_train(a, params["bn1_g"], params["bn1_b"]), 0.0)
    a = conv2d(a, params["conv2_w"], stride=1, pad=1, use_pallas=use_pallas)
    a = batchnorm_train(a, params["bn2_g"], params["bn2_b"])
    return a


def kinet_basic_block_forward(params, x, v, rand_vec, stride=1, use_pallas=True):
    a = conv_bn_path(params, x, stride=stride, use_pallas=use_pallas)

    # shortcut (1x1 conv + BN if stride != 1 or in_planes != planes; else identity)
    if params.get("sc_w") is not None:
        sx = batchnorm_train(conv2d(x, params["sc_w"], stride=stride, pad=0, use_pallas=use_pallas),
                             params["sc_bn_g"], params["sc_bn_b"])
        sv = batchnorm_train(conv2d(v, params["sc_w"], stride=stride, pad=0, use_pallas=use_pallas),
                             params["sc_bn_g"], params["sc_bn_b"])
    else:
        sx, sv = x, v

    out, v_out = kinet_dsmc_forward(sx, sv, a, rand_vec, use_pallas=use_pallas)
    out = jnp.maximum(out, 0.0)
    return out, v_out, rand_vec


# --------------------------------------------------------------------------------------
if __name__ == "__main__":
    key = jax.random.PRNGKey(0)
    B, Cin, H, W = 2, 4, 8, 8
    planes, stride = 4, 1                # identity shortcut in this configuration
    chnl = 16                            # rand_vec channel dimension (DSMC "particle channels")
    n = (H * W * Cin) // chnl            # 16 particles per batch element
    npairs = n * (n - 1) // 2            # 120 upper-triangle pairs

    k1, k2, k3, k4, k5 = jax.random.split(key, 5)
    params = {
        "conv1_w": 0.2 * jax.random.normal(k1, (planes, Cin, 3, 3), jnp.float32),
        "conv2_w": 0.2 * jax.random.normal(k2, (planes, planes, 3, 3), jnp.float32),
        "bn1_g": jnp.ones((planes,), jnp.float32),
        "bn1_b": jnp.zeros((planes,), jnp.float32),
        "bn2_g": jnp.ones((planes,), jnp.float32),
        "bn2_b": jnp.zeros((planes,), jnp.float32),
        "sc_w": None,                    # identity shortcut
    }

    # Positions scaled down so particles are close enough that the collision mask actually
    # fires (exercises the full DSMC collision path, not just v += a).
    x = 0.05 * jax.random.normal(k3, (B, Cin, H, W), jnp.float32)
    v = jax.random.normal(k4, (B, Cin, H, W), jnp.float32)
    rv = jax.random.normal(k5, (B, chnl, npairs), jnp.float32)
    rand_vec = rv / jnp.linalg.norm(rv, axis=1, keepdims=True)   # unit vectors over chnl dim

    # Full Pallas forward.
    out, v_out, rv_out = kinet_basic_block_forward(params, x, v, rand_vec,
                                                   stride=stride, use_pallas=True)
    jax.block_until_ready((out, v_out))
    assert out.shape == (B, Cin, H, W) and v_out.shape == (B, Cin, H, W)
    assert bool(jnp.isfinite(out).all()) and bool(jnp.isfinite(v_out).all())

    # Check 1: Pallas conv/BN/ReLU path vs plain-JAX reference of the same math.
    a_pal = conv_bn_path(params, x, stride=stride, use_pallas=True)
    a_ref = conv_bn_path(params, x, stride=stride, use_pallas=False)
    assert jnp.allclose(a_pal, a_ref, atol=1e-4, rtol=1e-4), "conv path mismatch vs reference"

    # Check 2: DSMC Pallas kernel vs plain-JAX reference on identical inputs.
    xo_k, vo_k = kinet_dsmc_forward(x, v, a_ref, rand_vec, use_pallas=True)
    xo_r, vo_r = kinet_dsmc_forward(x, v, a_ref, rand_vec, use_pallas=False)
    assert jnp.allclose(xo_k, xo_r, atol=1e-4, rtol=1e-4), "DSMC x mismatch vs reference"
    assert jnp.allclose(vo_k, vo_r, atol=1e-4, rtol=1e-4), "DSMC v mismatch vs reference"

    print("KERNEL_OK")
</pallas_src>

<mosaic_0001>
module attributes {stable_mosaic.version = 11 : i64} {
  func.func @_matmul_kernel(%arg0: i32, %arg1: i32, %arg2: i32, %arg3: memref<128x128xf32, #tpu.memory_space<vmem>>, %arg4: memref<128x128xf32, #tpu.memory_space<vmem>>, %arg5: memref<128x128xf32, #tpu.memory_space<vmem>>, %arg6: memref<128x128xf32, #tpu.memory_space<vmem>>) attributes {dimension_semantics = [#tpu.dimension_semantics<parallel>, #tpu.dimension_semantics<parallel>, #tpu.dimension_semantics<arbitrary>], iteration_bounds = array<i64: 1, 1, 1>, scalar_prefetch = 0 : i64, scratch_operands = 1 : i64, tpu.core_type = #tpu.core_type<tc>, window_params = [{transform_indices = @transform_0, window_bounds = array<i64: 128, 128>}, {transform_indices = @transform_1, window_bounds = array<i64: 128, 128>}, {transform_indices = @transform_2, window_bounds = array<i64: 128, 128>}]} {
    %c0_i32 = arith.constant 0 : i32
    %0 = arith.cmpi eq, %arg2, %c0_i32 : i32
    %1 = arith.extui %0 : i1 to i32
    %c0_i32_0 = arith.constant 0 : i32
    %2 = arith.cmpi ne, %1, %c0_i32_0 : i32
    scf.if %2 {
      %cst_12 = arith.constant 0.000000e+00 : f32
      %11 = vector.broadcast %cst_12 : f32 to vector<128x128xf32>
      %c0_13 = arith.constant 0 : index
      %c0_14 = arith.constant 0 : index
      %12 = vector.load %arg6[%c0_13, %c0_14] : memref<128x128xf32, #tpu.memory_space<vmem>>, vector<128x128xf32>
      tpu.vector_store %arg6[%c0_13, %c0_14], %11 {strides = array<i32>} : memref<128x128xf32, #tpu.memory_space<vmem>>, vector<128x128xf32>,
    } else {
    }
    %c0 = arith.constant 0 : index
    %c0_1 = arith.constant 0 : index
    %3 = vector.load %arg6[%c0, %c0_1] : memref<128x128xf32, #tpu.memory_space<vmem>>, vector<128x128xf32>
    %c0_2 = arith.constant 0 : index
    %c0_3 = arith.constant 0 : index
    %4 = vector.load %arg3[%c0_2, %c0_3] : memref<128x128xf32, #tpu.memory_space<vmem>>, vector<128x128xf32>
    %c0_4 = arith.constant 0 : index
    %c0_5 = arith.constant 0 : index
    %5 = vector.load %arg4[%c0_4, %c0_5] : memref<128x128xf32, #tpu.memory_space<vmem>>, vector<128x128xf32>
    %cst = arith.constant dense<0.000000e+00> : vector<128x128xf32>
    %6 = tpu.matmul %4, %5, %cst {dimension_numbers = #tpu.dot_dimension_numbers<[1], [0], [0], [1], [0, 0, 1, 1], [], []>} : vector<128x128xf32>, vector<128x128xf32>, vector<128x128xf32> -> vector<128x128xf32>
    %7 = arith.addf %3, %6 : vector<128x128xf32>
    %c0_6 = arith.constant 0 : index
    %c0_7 = arith.constant 0 : index
    %8 = vector.load %arg6[%c0_6, %c0_7] : memref<128x128xf32, #tpu.memory_space<vmem>>, vector<128x128xf32>
    tpu.vector_store %arg6[%c0_6, %c0_7], %7 {strides = array<i32>} : memref<128x128xf32, #tpu.memory_space<vmem>>, vector<128x128xf32>,
    %c0_8 = arith.constant 0 : index
    %c0_9 = arith.constant 0 : index
    %9 = vector.load %arg6[%c0_8, %c0_9] : memref<128x128xf32, #tpu.memory_space<vmem>>, vector<128x128xf32>
    %c0_10 = arith.constant 0 : index
    %c0_11 = arith.constant 0 : index
    %10 = vector.load %arg5[%c0_10, %c0_11] : memref<128x128xf32, #tpu.memory_space<vmem>>, vector<128x128xf32>
    tpu.vector_store %arg5[%c0_10, %c0_11], %9 {strides = array<i32>} : memref<128x128xf32, #tpu.memory_space<vmem>>, vector<128x128xf32>,
    return
  }
  func.func @transform_0(%arg0: i32, %arg1: i32, %arg2: i32) -> (i32, i32) {
    %c0_i32 = arith.constant 0 : i32
    return %arg0, %arg2 : i32, i32
  }
  func.func @transform_1(%arg0: i32, %arg1: i32, %arg2: i32) -> (i32, i32) {
    %c0_i32 = arith.constant 0 : i32
    return %arg2, %arg1 : i32, i32
  }
  func.func @transform_2(%arg0: i32, %arg1: i32, %arg2: i32) -> (i32, i32) {
    %c0_i32 = arith.constant 0 : i32
    return %arg0, %arg1 : i32, i32
  }
}

</mosaic_0001>

<bundles_post_ra>
// kernel: tpu_custom_call.1
= control target key start
LH: loop header
LB: loop body
LE: loop exit
PB: predicated region body
PF: predicated region fallthrough
CT: control target
= control target key end

     0   :  { %7 = vsyncpa [#allocation4], 0  ;;  %s430_s0 = inlined_call_operand.hbm [shape: f32[128,128], index: 0, kind: input, shape index: {}]   ;;  %s431_s1 = inlined_call_operand.hbm [shape: f32[128,128], index: 1, kind: input, shape index: {}]   ;;  %s432_s2 = inlined_call_operand.hbm [shape: f32[128,128], index: 2, kind: output, shape index: {}]  }
   0x1   :  { %8 = vsyncpa [#allocation7], 0 }
   0x2   :  { %9 = vsyncpa [#allocation5], 0  ;;  %s14_s11 = sshll.u32 %s430_s0, 4  ;;  %s392_s12 = smov [#allocation3]   ;;  %s15_s11 = int_to_ptr.hbm [resolvable:$true] %s14_s11 }
   0x3   :  { %s16_s13 = sshll.u32 %s392_s12, 4  ;;  %s27_s16 = sshll.u32 %s431_s1, 4  ;;  %s17_s13 = int_to_ptr.vmem [resolvable:$true] %s16_s13  ;;  %s28_s16 = int_to_ptr.hbm [resolvable:$true] %s27_s16 }
   0x4   :  { %s393_s17 = smov 128   ;;  %s394_s18 = smov 8  }
   0x5   :  { %22 = dma.hbm_to_vmem [thread:$0]  %s15_s11, 2048, %s17_s13, [#allocation4], %s393_s17, %s393_s17, %s394_s18  }
   0x6   :  { %s395_s19 = smov [#allocation6]  }
   0x7   :  { %s29_s20 = sshll.u32 %s395_s19, 4  ;;  %s30_s20 = int_to_ptr.vmem [resolvable:$true] %s29_s20 }
   0x8   :  { %35 = dma.hbm_to_vmem [thread:$0]  %s28_s16, 2048, %s30_s20, [#allocation7], %s393_s17, %s393_s17, %s394_s18  }
   0x9   :  { %386 = dma.done.wait [#allocation4], 2048  }
   0xa   :  { %387 = vsyncadd [#allocation4], 4294965248 }
   0xb   :  { %388 = dma.done.wait [#allocation7], 2048  }
   0xc   :  { %389 = vsyncadd [#allocation7], 4294965248  ;;  %v111_v0 = vld [vmem:[#allocation6 + $0x78] sm:$0xff]  ;;  %v110_v1 = vld [vmem:[#allocation6 + $0x70] sm:$0xff]  ;;  %s396_s0 = smov [#allocation8]   ;;  %s247_s23 = sshll.u32 %s432_s2, 4  ;;  %s248_s23 = int_to_ptr.hbm [resolvable:$true] %s247_s23 }
   0xd   :  { %262 = vmatpush.msra.mxu2 %v111_v0  ;;  %263 = vmatpush.msra.mxu3 %v111_v0  ;;  %v109_v2 = vld [vmem:[#allocation6 + $0x68] sm:$0xff]  ;;  %v108_v3 = vld [vmem:[#allocation6 + $0x60] sm:$0xff]  ;;  %v107_v4 = vld [vmem:[#allocation6 + $0x58] sm:$0xff]  ;;  %s245_s1 = sshll.u32 %s396_s0, 4  ;;  %s246_s1 = int_to_ptr.vmem [resolvable:$true] %s245_s1 }
   0xe   :  { %112 = vmatpush.msra.mxu0 %v111_v0  ;;  %261 = vmatpush.msra.mxu1 %v111_v0  ;;  %v106_v5 = vld [vmem:[#allocation6 + $0x50] sm:$0xff]  ;;  %v105_v6 = vld [vmem:[#allocation6 + $0x48] sm:$0xff]  ;;  %v104_v7 = vld [vmem:[#allocation6 + $0x40] sm:$0xff] }
   0xf   :  { %265 = vmatpush.msra.mxu2 %v110_v1  ;;  %266 = vmatpush.msra.mxu3 %v110_v1  ;;  %v103_v8 = vld [vmem:[#allocation6 + $0x38] sm:$0xff]  ;;  %v102_v9 = vld [vmem:[#allocation6 + $0x30] sm:$0xff]  ;;  %v101_v10 = vld [vmem:[#allocation6 + $0x28] sm:$0xff] }
  0x10   :  { %113 = vmatpush.msra.mxu0 %v110_v1  ;;  %264 = vmatpush.msra.mxu1 %v110_v1  ;;  %v100_v11 = vld [vmem:[#allocation6 + $0x20] sm:$0xff]  ;;  %v99_v12 = vld [vmem:[#allocation6 + $0x18] sm:$0xff]  ;;  %v98_v13 = vld [vmem:[#allocation6 + $0x10] sm:$0xff] }
  0x11   :  { %268 = vmatpush.msra.mxu2 %v109_v2  ;;  %269 = vmatpush.msra.mxu3 %v109_v2  ;;  %v97_v14 = vld [vmem:[#allocation6 + $0x8] sm:$0xff]  ;;  %v96_v15 = vld [vmem:[#allocation6] sm:$0xff]  ;;  %v90_v24 = vld [vmem:[#allocation3 + $0x50] sm:$0xff] }
  0x12   :  { %114 = vmatpush.msra.mxu0 %v109_v2  ;;  %267 = vmatpush.msra.mxu1 %v109_v2  ;;  %v88_v16 = vld [vmem:[#allocation3 + $0x40] sm:$0xff]  ;;  %v89_v20 = vld [vmem:[#allocation3 + $0x48] sm:$0xff]  ;;  %v94_v25 = vld [vmem:[#allocation3 + $0x70] sm:$0xff] }
  0x13   :  { %271 = vmatpush.msra.mxu2 %v108_v3  ;;  %272 = vmatpush.msra.mxu3 %v108_v3  ;;  %v92_v17 = vld [vmem:[#allocation3 + $0x60] sm:$0xff]  ;;  %v93_v21 = vld [vmem:[#allocation3 + $0x68] sm:$0xff]  ;;  %v82_v26 = vld [vmem:[#allocation3 + $0x10] sm:$0xff] }
  0x14   :  { %115 = vmatpush.msra.mxu0 %v108_v3  ;;  %270 = vmatpush.msra.mxu1 %v108_v3  ;;  %v80_v18 = vld [vmem:[#allocation3] sm:$0xff]  ;;  %v81_v22 = vld [vmem:[#allocation3 + $0x8] sm:$0xff]  ;;  %v86_v27 = vld [vmem:[#allocation3 + $0x30] sm:$0xff] }
  0x15   :  { %274 = vmatpush.msra.mxu2 %v107_v4  ;;  %275 = vmatpush.msra.mxu3 %v107_v4  ;;  %v84_v19 = vld [vmem:[#allocation3 + $0x20] sm:$0xff]  ;;  %v85_v23 = vld [vmem:[#allocation3 + $0x28] sm:$0xff]  ;;  %v91_v28 = vld [vmem:[#allocation3 + $0x58] sm:$0xff] }
  0x16   :  { %116 = vmatpush.msra.mxu0 %v107_v4  ;;  %273 = vmatpush.msra.mxu1 %v107_v4  ;;  %v95_v29 = vld [vmem:[#allocation3 + $0x78] sm:$0xff] }
  0x17   :  { %277 = vmatpush.msra.mxu2 %v106_v5  ;;  %278 = vmatpush.msra.mxu3 %v106_v5  ;;  %v83_v30 = vld [vmem:[#allocation3 + $0x18] sm:$0xff] }
  0x18   :  { %117 = vmatpush.msra.mxu0 %v106_v5  ;;  %276 = vmatpush.msra.mxu1 %v106_v5  ;;  %v87_v31 = vld [vmem:[#allocation3 + $0x38] sm:$0xff] }
  0x19   :  { %280 = vmatpush.msra.mxu2 %v105_v6  ;;  %281 = vmatpush.msra.mxu3 %v105_v6 }
  0x1a   :  { %118 = vmatpush.msra.mxu0 %v105_v6  ;;  %279 = vmatpush.msra.mxu1 %v105_v6 }
  0x1b   :  { %283 = vmatpush.msra.mxu2 %v104_v7  ;;  %284 = vmatpush.msra.mxu3 %v104_v7 }
  0x1c   :  { %119 = vmatpush.msra.mxu0 %v104_v7  ;;  %282 = vmatpush.msra.mxu1 %v104_v7 }
  0x1d   :  { %286 = vmatpush.msra.mxu2 %v103_v8  ;;  %287 = vmatpush.msra.mxu3 %v103_v8 }
  0x1e   :  { %120 = vmatpush.msra.mxu0 %v103_v8  ;;  %285 = vmatpush.msra.mxu1 %v103_v8 }
  0x1f   :  { %289 = vmatpush.msra.mxu2 %v102_v9  ;;  %290 = vmatpush.msra.mxu3 %v102_v9 }
  0x20   :  { %121 = vmatpush.msra.mxu0 %v102_v9  ;;  %288 = vmatpush.msra.mxu1 %v102_v9 }
  0x21   :  { %292 = vmatpush.msra.mxu2 %v101_v10  ;;  %293 = vmatpush.msra.mxu3 %v101_v10 }
  0x22   :  { %122 = vmatpush.msra.mxu0 %v101_v10  ;;  %291 = vmatpush.msra.mxu1 %v101_v10 }
  0x23   :  { %295 = vmatpush.msra.mxu2 %v100_v11  ;;  %296 = vmatpush.msra.mxu3 %v100_v11 }
  0x24   :  { %123 = vmatpush.msra.mxu0 %v100_v11  ;;  %294 = vmatpush.msra.mxu1 %v100_v11 }
  0x25   :  { %298 = vmatpush.msra.mxu2 %v99_v12  ;;  %299 = vmatpush.msra.mxu3 %v99_v12 }
  0x26   :  { %124 = vmatpush.msra.mxu0 %v99_v12  ;;  %297 = vmatpush.msra.mxu1 %v99_v12 }
  0x27   :  { %301 = vmatpush.msra.mxu2 %v98_v13  ;;  %302 = vmatpush.msra.mxu3 %v98_v13 }
  0x28   :  { %125 = vmatpush.msra.mxu0 %v98_v13  ;;  %300 = vmatpush.msra.mxu1 %v98_v13 }
  0x29   :  { %304 = vmatpush.msra.mxu2 %v97_v14  ;;  %305 = vmatpush.msra.mxu3 %v97_v14 }
  0x2a   :  { %126 = vmatpush.msra.mxu0 %v97_v14  ;;  %303 = vmatpush.msra.mxu1 %v97_v14 }
  0x2b   :  { %307 = vmatpush.msra.mxu2 %v96_v15  ;;  %308 = vmatpush.msra.mxu3 %v96_v15 }
  0x2c   :  { %152 = vmatmul.f32.vlgmr.msra.gmra.mxu2 %v88_v16  ;;  %164 = vmatmul.f32.vlgmr.msra.gmra.mxu3 %v92_v17 }
  0x2d   :  { %127 = vmatpush.msra.mxu0 %v96_v15  ;;  %306 = vmatpush.msra.mxu1 %v96_v15 }
  0x2e   :  { %128 = vmatmul.f32.vlgmr.msra.gmra.mxu0 %v80_v18  ;;  %140 = vmatmul.f32.vlgmr.msra.gmra.mxu1 %v84_v19 }
  0x34   :  { %155 = vmatmul.f32.gmra.mxu2 %v89_v20  ;;  %167 = vmatmul.f32.gmra.mxu3 %v93_v21 }
  0x36   :  { %131 = vmatmul.f32.gmra.mxu0 %v81_v22  ;;  %143 = vmatmul.f32.gmra.mxu1 %v85_v23 }
  0x3c   :  { %158 = vmatmul.f32.gmra.mxu2 %v90_v24  ;;  %170 = vmatmul.f32.gmra.mxu3 %v94_v25 }
  0x3e   :  { %134 = vmatmul.f32.gmra.mxu0 %v82_v26  ;;  %146 = vmatmul.f32.gmra.mxu1 %v86_v27 }
  0x44   :  { %161 = vmatmul.f32.gmra.mxu2 %v91_v28  ;;  %173 = vmatmul.f32.gmra.mxu3 %v95_v29 }
  0x46   :  { %137 = vmatmul.f32.gmra.mxu0 %v83_v30  ;;  %149 = vmatmul.f32.gmra.mxu1 %v87_v31 }
  0xab   :  { %v129_v32 = vpop.f32.mrf.mxu0  ;;  %v141_v33 = vpop.f32.mrf.mxu1 }
  0xac   :  { %225 = vst [vmem:[#allocation8] sm:$0xff] %v129_v32 }
  0xad   :  { %229 = vst [vmem:[#allocation8 + $0x20] sm:$0xff] %v141_v33 }
  0xaf   :  { %v153_v34 = vpop.f32.mrf.mxu2  ;;  %v165_v35 = vpop.f32.mrf.mxu3 }
  0xb0   :  { %233 = vst [vmem:[#allocation8 + $0x40] sm:$0xff] %v153_v34 }
  0xb1   :  { %237 = vst [vmem:[#allocation8 + $0x60] sm:$0xff] %v165_v35 }
  0xb3   :  { %v132_v36 = vpop.f32.mrf.mxu0  ;;  %v144_v37 = vpop.f32.mrf.mxu1 }
  0xb4   :  { %226 = vst [vmem:[#allocation8 + $0x8] sm:$0xff] %v132_v36 }
  0xb5   :  { %230 = vst [vmem:[#allocation8 + $0x28] sm:$0xff] %v144_v37 }
  0xb7   :  { %v156_v38 = vpop.f32.mrf.mxu2  ;;  %v168_v39 = vpop.f32.mrf.mxu3 }
  0xb8   :  { %234 = vst [vmem:[#allocation8 + $0x48] sm:$0xff] %v156_v38 }
  0xb9   :  { %238 = vst [vmem:[#allocation8 + $0x68] sm:$0xff] %v168_v39 }
  0xbb   :  { %v135_v40 = vpop.f32.mrf.mxu0  ;;  %v147_v41 = vpop.f32.mrf.mxu1 }
  0xbc   :  { %227 = vst [vmem:[#allocation8 + $0x10] sm:$0xff] %v135_v40 }
  0xbd   :  { %231 = vst [vmem:[#allocation8 + $0x30] sm:$0xff] %v147_v41 }
  0xbf   :  { %v159_v42 = vpop.f32.mrf.mxu2  ;;  %v171_v43 = vpop.f32.mrf.mxu3 }
  0xc0   :  { %235 = vst [vmem:[#allocation8 + $0x50] sm:$0xff] %v159_v42 }
  0xc1   :  { %239 = vst [vmem:[#allocation8 + $0x70] sm:$0xff] %v171_v43 }
  0xc3   :  { %v138_v44 = vpop.f32.mrf.mxu0  ;;  %v150_v45 = vpop.f32.mrf.mxu1 }
  0xc4   :  { %228 = vst [vmem:[#allocation8 + $0x18] sm:$0xff] %v138_v44 }
  0xc5   :  { %232 = vst [vmem:[#allocation8 + $0x38] sm:$0xff] %v150_v45 }
  0xc7   :  { %v162_v46 = vpop.f32.mrf.mxu2  ;;  %v174_v47 = vpop.f32.mrf.mxu3 }
  0xc8   :  { %236 = vst [vmem:[#allocation8 + $0x58] sm:$0xff] %v162_v46 }
  0xc9   :  { %240 = vst [vmem:[#allocation8 + $0x78] sm:$0xff] %v174_v47 }
  0xca   :  { %253 = dma.vmem_to_hbm [thread:$0]  %s246_s1, 2048, %s248_s23, [#allocation5], %s393_s17, %s393_s17, %s394_s18  }
  0xcb   :  { %390 = dma.done.wait [#allocation5], 2048  }
  0xcc   :  { %391 = vsyncadd [#allocation5], 4294965248 }
  0xcd   :  { %258 = vsyncpa [#allocation4], 1 }
  0xce   :  { %259 = vsyncpa [#allocation7], 1 }
  0xcf   :  { %260 = vsyncpa [#allocation5], 1 }

</bundles_post_ra>
